<compile_context>
chip_gen: v6e
topology: v6e:2x2x1
jax: 0.10.0
libtpu: 0.0.40
codegen_flags: <defaults>
</compile_context>

<pallas_src>
import functools

import jax
import jax.numpy as jnp
from jax.experimental import pallas as pl
from jax.experimental.pallas import tpu as pltpu


def _loglinear_kernel(x_ref, w_ref, b_ref, o_ref, *, apply_sigmoid):
    # x_ref: (TM, D) activation tile; w_ref: (1, D) lane-dense weight row;
    # b_ref: (1,) scalar bias in SMEM; o_ref: (1, TM) lane-dense output row.
    logits = jax.lax.dot_general(
        w_ref[...],
        x_ref[...],
        dimension_numbers=(((1,), (1,)), ((), ())),   # contract over D -> (1, TM)
        preferred_element_type=jnp.float32,
    ) + b_ref[0]
    if apply_sigmoid:
        logits = jax.nn.sigmoid(logits)               # EUP transcendental (free slot)
    o_ref[...] = logits.astype(o_ref.dtype)


def _round_up(v, m):
    return (v + m - 1) // m * m


def _pick_tile(batch, feat_bytes_per_row, block_m, vmem_budget_bytes):
    # Largest tile <= block_m that keeps the double-buffered x tile inside the
    # VMEM budget; prefer multiples of 128 (lane-dense output blocks), fall
    # back to multiples of 8.
    cap = max(8, (vmem_budget_bytes // (2 * feat_bytes_per_row)))
    tm = min(block_m, cap, _round_up(batch, 8))
    if tm >= 128:
        tm = (tm // 128) * 128
    else:
        tm = max(8, (tm // 8) * 8)
    return tm


def _loglinear_call(x, w, b, *, apply_sigmoid, block_m=512,
                    vmem_budget_bytes=16 * 1024 * 1024):
    B, D = x.shape
    w = jnp.asarray(w, x.dtype).reshape(1, D)        # lane-dense weight row
    b = jnp.asarray(b, jnp.float32).reshape(1)       # scalar bias in SMEM

    tm = _pick_tile(B, D * x.dtype.itemsize, block_m, vmem_budget_bytes)

    b_pad = _round_up(B, tm)
    if b_pad != B:
        x = jnp.pad(x, ((0, b_pad - B), (0, 0)))     # zero-pad ragged last tile
    num_tiles = b_pad // tm

    kernel = functools.partial(_loglinear_kernel, apply_sigmoid=apply_sigmoid)
    out = pl.pallas_call(
        kernel,
        out_shape=jax.ShapeDtypeStruct((1, b_pad), jnp.float32),
        grid=(num_tiles,),
        in_specs=[
            pl.BlockSpec((tm, D), lambda i: (i, 0)),              # x: pipelined tiles
            pl.BlockSpec((1, D), lambda i: (0, 0)),               # w: resident row
            pl.BlockSpec(memory_space=pltpu.MemorySpace.SMEM),    # bias scalar
        ],
        out_specs=pl.BlockSpec((1, tm), lambda i: (0, i)),        # lane-dense slab
        compiler_params=pltpu.CompilerParams(
            dimension_semantics=("parallel",),                    # megacore on v7x
        ),
    )(x, w, b)

    # (1, B_pad) lane-dense slab -> (B, 1) logits / probabilities.
    return out.reshape(b_pad, 1)[:B]


def loglinear_forward(x, w, b, **kwargs):
    """forward(x) == x @ w.T + b  -> logits of shape (batch, 1)."""
    return _loglinear_call(x, w, b, apply_sigmoid=False, **kwargs)


def loglinear_predict(x, w, b, **kwargs):
    """predict(x) == sigmoid(forward(x)); sigmoid fused into the kernel epilogue."""
    return _loglinear_call(x, w, b, apply_sigmoid=True, **kwargs)


if __name__ == "__main__":
    batch = 300          # not a multiple of the tile -> exercises the ragged path
    embedding_dim = 128

    key = jax.random.PRNGKey(0)
    kx, kw, kb = jax.random.split(key, 3)

    # nn.Linear(embedding_dim, 1)-style init: U(-1/sqrt(D), 1/sqrt(D)).
    bound = 1.0 / jnp.sqrt(jnp.float32(embedding_dim))
    w = jax.random.uniform(kw, (1, embedding_dim), jnp.float32, -bound, bound)
    b = jax.random.uniform(kb, (1,), jnp.float32, -bound, bound)
    x = jax.random.normal(kx, (batch, embedding_dim), jnp.float32)

    # block_m=128 -> 3 batch tiles (2 full + 1 padded) to exercise pipelining.
    logits = loglinear_forward(x, w, b, block_m=128)
    probs = loglinear_predict(x, w, b, block_m=128)
    jax.block_until_ready(logits)
    jax.block_until_ready(probs)

    # Reference check against plain JAX.
    ref_logits = x @ w.T + b[0]
    assert logits.shape == (batch, 1)
    assert probs.shape == (batch, 1)
    assert jnp.allclose(logits, ref_logits, atol=2e-3, rtol=2e-3)
    assert jnp.allclose(probs, jax.nn.sigmoid(ref_logits), atol=2e-3, rtol=2e-3)

    print("KERNEL_OK")
</pallas_src>

<mosaic_0001>
module attributes {stable_mosaic.version = 11 : i64} {
  func.func @_loglinear_kernel(%arg0: i32, %arg1: memref<128x128xf32, #tpu.memory_space<vmem>>, %arg2: memref<1x128xf32, #tpu.memory_space<vmem>>, %arg3: memref<1xf32, #tpu.memory_space<smem>>, %arg4: memref<1x128xf32, #tpu.memory_space<vmem>>) attributes {dimension_semantics = [#tpu.dimension_semantics<parallel>], iteration_bounds = array<i64: 3>, scalar_prefetch = 0 : i64, scratch_operands = 0 : i64, tpu.core_type = #tpu.core_type<tc>, window_params = [{transform_indices = @transform_0, window_bounds = array<i64: 128, 128>}, {pipeline_mode = #tpu.pipeline_mode<synchronous>, transform_indices = @transform_1, window_bounds = array<i64: 1, 128>}, {transform_indices = @transform_2, window_bounds = array<i64: 1>}, {transform_indices = @transform_3, window_bounds = array<i64: 1, 128>}]} {
    %c0 = arith.constant 0 : index
    %c0_0 = arith.constant 0 : index
    %0 = vector.load %arg2[%c0, %c0_0] : memref<1x128xf32, #tpu.memory_space<vmem>>, vector<1x128xf32>
    %c0_1 = arith.constant 0 : index
    %c0_2 = arith.constant 0 : index
    %1 = vector.load %arg1[%c0_1, %c0_2] : memref<128x128xf32, #tpu.memory_space<vmem>>, vector<128x128xf32>
    %cst = arith.constant dense<0.000000e+00> : vector<1x128xf32>
    %2 = tpu.matmul %0, %1, %cst {dimension_numbers = #tpu.dot_dimension_numbers<[1], [1], [0], [0], [0, 0, 1, 0], [], []>} : vector<1x128xf32>, vector<128x128xf32>, vector<1x128xf32> -> vector<1x128xf32>
    %c0_3 = arith.constant 0 : index
    %3 = memref.load %arg3[%c0_3] : memref<1xf32, #tpu.memory_space<smem>>
    %4 = vector.broadcast %3 : f32 to vector<1x128xf32>
    %5 = arith.addf %2, %4 : vector<1x128xf32>
    %c0_4 = arith.constant 0 : index
    %c0_5 = arith.constant 0 : index
    %6 = vector.load %arg4[%c0_4, %c0_5] : memref<1x128xf32, #tpu.memory_space<vmem>>, vector<1x128xf32>
    tpu.vector_store %arg4[%c0_4, %c0_5], %5 {strides = array<i32>} : memref<1x128xf32, #tpu.memory_space<vmem>>, vector<1x128xf32>,
    return
  }
  func.func @transform_0(%arg0: i32) -> (i32, i32) {
    %c0_i32 = arith.constant 0 : i32
    %c0_i32_0 = arith.constant 0 : i32
    return %arg0, %c0_i32 : i32, i32
  }
  func.func @transform_1(%arg0: i32) -> (i32, i32) {
    %c0_i32 = arith.constant 0 : i32
    %c0_i32_0 = arith.constant 0 : i32
    %c0_i32_1 = arith.constant 0 : i32
    return %c0_i32, %c0_i32_0 : i32, i32
  }
  func.func @transform_2(%arg0: i32) -> i32 {
    %c0_i32 = arith.constant 0 : i32
    %c0_i32_0 = arith.constant 0 : i32
    return %c0_i32 : i32
  }
  func.func @transform_3(%arg0: i32) -> (i32, i32) {
    %c0_i32 = arith.constant 0 : i32
    %c0_i32_0 = arith.constant 0 : i32
    return %c0_i32, %arg0 : i32, i32
  }
}

</mosaic_0001>

<bundles_post_ra>
// kernel: tpu_custom_call.1
= control target key start
LH: loop header
LB: loop body
LE: loop exit
PB: predicated region body
PF: predicated region fallthrough
CT: control target
= control target key end

     0   :  { %s762_s0 = inlined_call_operand.hbm [shape: f32[384,128], index: 0, kind: input, shape index: {}]   ;;  %s763_s1 = inlined_call_operand.vmem [shape: f32[1,128], index: 1, kind: input, shape index: {}]   ;;  %s764_s2 = inlined_call_operand.<no memory space> [shape: f32[1], index: 2, kind: input, shape index: {}]   ;;  %s765_s3 = inlined_call_operand.hbm [shape: f32[1,384], index: 3, kind: output, shape index: {}]  }
   0x1   :  { %8 = sst [smem:[#allocation2]] %s764_s2 }
   0x2   :  { %9 = vsyncpa [#allocation4], 0 }
   0x3   :  { %11 = vsyncpa [#allocation4 + $0x1], 0 }
   0x4   :  { %12 = vsyncpa [#allocation5], 0 }
   0x5   :  { %14 = vsyncpa [#allocation5 + $0x1], 0  ;;  %s596_s14 = smov 0   ;;  %s598_s15 = smov 0  }
   0x6   :  { %s600_s16 = smov 0   ;;  %s602_s17 = smov 0  }
   0x7 LB: > { %s617_s2 = sadd.s32 4294967295, %s565_s17   ;;  %s359_s18 = sadd.s32 4294967294, %s565_s17   ;;  %s565_s17 = sphi %s602_s17, %s779_s17   ;;  %s561_s16 = sphi %s600_s16, %s778_s16   ;;  %s557_s15 = sphi %s598_s15, %s777_s15   ;;  %s553_s14 = sphi %s596_s14, %s776_s14  }
   0x8   : > { %s621_s19 = sadd.s32 1, %s565_s17   ;;  %s27_s20 = sadd.s32 1, %s561_s16 }
   0x9   : > { %s24_s21 = ssub.s32 %s565_s17, %s621_s19  ;;  %p34_p0 = scmp.ne.s32.totalorder %s561_s16, %s557_s15 }
   0xa   : > { %p25_p1 = scmp.eq.s32.totalorder %s24_s21, 0  ;;  %p35_p2 = scmp.eq.s32.totalorder %s565_s17, 0 }
   0xb   : > { %p40_p3 = scmp.ne.s32.totalorder %s557_s15, %s553_s14  ;;  %p41_p4 = scmp.eq.s32.totalorder %s617_s2, 0 }
   0xc   : > { %s633_s22 = scalar_select %p25_p1, %s561_s16, %s27_s20  }
   0xd   : > { %p635_p5 = por %p35_p2, %p34_p0  ;;  %p639_p6 = por %p41_p4, %p40_p3 }
   0xe   : > { %p106_p7 = scmp.eq.s32.totalorder %s617_s2, 2  ;;  %p112_p8 = scmp.eq.s32.totalorder %s359_s18, 2 }
   0xf   : > { %s769_s24 = scalar_select %p639_p6, 1, 0 }
  0x10   : > { %p435_p9 = scmp.lt.s32.totalorder %s565_s17, 3  ;;  %p645_p10 = por %p106_p7, %p34_p0 }
  0x11   : > { %p649_p11 = por %p112_p8, %p40_p3  ;;  %s138_s27 = sand.u32 1, %s561_s16  }
  0x12   : > { %s770_s25 = scalar_select %p645_p10, 1, 0 }
  0x13   : > { %s771_s26 = scalar_select %p649_p11, 1, 0 }
  0x14   : > { %s370_s28 = sshll.u32 %s565_s17, 11  ;;  %s362_s29 = sshll.u32 %s138_s27, 7 }
  0x15   : > { %s658_s5 = scalar_lea.hbm %s762_s0, %s370_s28  ;;  %s142_s6 = scalar_lea.vmem [#allocation3], %s362_s29 }
  0x16   : > { %s149_s7 = sshll.u32 %s142_s6, 4  ;;  %p662_p12 = pnand %p435_p9, %p635_p5  ;;  %s666_s7 = int_to_ptr.vmem [resolvable:$true] %s149_s7 }
  0x17   : > { %s668_s9 = scalar_lea.sflag [#allocation4], %s138_s27  ;;  %s473_s10 = scalar_lea.hbm %s658_s5, 2048 }
  0x18   : > { %p474_p13 = scmp.ne.s32.totalorder %s658_s5, %s473_s10  ;;  %p475_p0 = pneg %p662_p12 }
  0x19   : > { %s478_s13 = scalar_lea.hbm %s762_s0, 6144  ;;  %p479_p3 = scmp.lt.s32.totalorder %s658_s5, %s762_s0 }
  0x1a   : > { %p476_p1 = pnand %p475_p0, %p474_p13  ;;  %p480_p4 = scmp.lt.s32.totalorder %s478_s13, %s473_s10 }
  0x1c   : > { %p477_p2 = pneg %p476_p1  ;;  %p481_p5 = por %p480_p4, %p479_p3 }
  0x1e   : > { %p482_p7 = pnand %p481_p5, %p477_p2 }
  0x20   : > { %485 = shalt.err (!%p482_p7)
}
  0x21   : > { %s486_s21 = scalar_lea.vmem %s666_s7, 2048  ;;  %s567_s23 = smov [#allocation3]  }
  0x22   : > { %p487_p8 = scmp.ne.s32.totalorder %s666_s7, %s486_s21  ;;  %s491_s27 = sshll.u32 %s567_s23, 4  ;;  %s492_s27 = int_to_ptr.vmem [resolvable:$false] %s491_s27 }
  0x23   : > { %s493_s28 = scalar_lea.vmem %s492_s27, 4096  ;;  %p494_p1 = scmp.lt.s32.totalorder %s666_s7, %s492_s27 }
  0x24   : > { %p489_p9 = pnand %p487_p8, %p475_p0  ;;  %p495_p11 = scmp.lt.s32.totalorder %s493_s28, %s486_s21 }
  0x26   : > { %p490_p13 = pneg %p489_p9  ;;  %p496_p10 = por %p495_p11, %p494_p1 }
  0x28   : > { %p497_p6 = pnand %p496_p10, %p490_p13 }
  0x2a   : > { %500 = shalt.err (!%p497_p6)
}
  0x2b   : > { %s568_s29 = smov 128   ;;  %s569_s30 = smov 8  }
  0x2c   : > { %430 = dma.hbm_to_vmem [thread:$0]  (!%p662_p12), %s658_s5, 2048, %s666_s7, %s668_s9, %s568_s29, %s568_s29, %s569_s30  }
  0x2d   : > { %p365_p0 = scmp.ge.s32.totalorder %s565_s17, 1  ;;  %p157_p2 = scmp.lt.s32.totalorder %s565_s17, 4 }
  0x2f   : > { %p158_p3 = pnand %p365_p0, %p157_p2 }
  0x30   : > { %s692_s4 = sand.u32 (!%p158_p3), 1, %s557_s15   ;;  %p773_p6 = scmp.ne.s32.totalorder (!%p158_p3), %s769_s24, 0 }
  0x31   : > { %161 = sbr.rel (%p158_p3) target bundleno = 328 (0x148), region = 32  ;;  %s366_s6 = sshll.u32 (!%p158_p3), %s692_s4, 7 }
  0x32   : > { %s164_s10 = scalar_lea.sflag (!%p158_p3), [#allocation4], %s692_s4  ;;  %s696_s11 = scalar_lea.vmem (!%p158_p3), [#allocation3], %s366_s6 }
  0x36   : > { %544 = dma.done.wait (%p773_p6), %s164_s10, 2048  }
  0x37   : > { %546 = vsyncadd (%p773_p6), %s164_s10, 4294965248  ;;  %v570_v0 = vmov 0.0   ;;  %vm571_vm0 = vmmov 0   ;;  %v206_v1 = vld [vmem:[%s696_s11 + $0x78] sm:$0xff]  ;;  %v205_v2 = vld [vmem:[%s696_s11 + $0x70] sm:$0xff]  ;;  %s207_s7 = sld [smem:[#allocation2]] }
  0x38   : > { %388 = vmatprep.subr.mxu0 %v570_v0  ;;  %420 = vmatprep.mubr.msk.f32.mxu0 %vm571_vm0, %v570_v0  ;;  %v204_v3 = vld [vmem:[%s696_s11 + $0x68] sm:$0xff]  ;;  %v203_v4 = vld [vmem:[%s696_s11 + $0x60] sm:$0xff]  ;;  %v202_v5 = vld [vmem:[%s696_s11 + $0x58] sm:$0xff]  ;;  %s367_s8 = sshll.u32 %s617_s2, 4  ;;  %s188_s9 = scalar_lea.vmem [#allocation6], %s692_s4 }
  0x39   : > { %389 = vmatpush3.xpose.msra.mxu0 %v206_v1  ;;  %v201_v6 = vld [vmem:[%s696_s11 + $0x50] sm:$0xff]  ;;  %v200_v7 = vld [vmem:[%s696_s11 + $0x48] sm:$0xff]  ;;  %v199_v8 = vld [vmem:[%s696_s11 + $0x40] sm:$0xff]  ;;  %s293_s12 = sshll.u32 %s188_s9, 4  ;;  %s726_s20 = scalar_lea.hbm %s765_s3, %s367_s8  ;;  %s294_s12 = int_to_ptr.vmem [resolvable:$true] %s293_s12 }
  0x3a   : > { %390 = vmatprep.subr.mxu0 %v570_v0  ;;  %v198_v9 = vld [vmem:[%s696_s11 + $0x38] sm:$0xff]  ;;  %v197_v10 = vld [vmem:[%s696_s11 + $0x30] sm:$0xff]  ;;  %v196_v11 = vld [vmem:[%s696_s11 + $0x28] sm:$0xff]  ;;  %s281_s21 = scalar_lea.sflag [#allocation5], %s692_s4  ;;  %s501_s23 = scalar_lea.vmem %s294_s12, 16 }
  0x3b   : > { %v195_v12 = vld [vmem:[%s696_s11 + $0x20] sm:$0xff]  ;;  %v194_v13 = vld [vmem:[%s696_s11 + $0x18] sm:$0xff]  ;;  %v193_v14 = vld [vmem:[%s696_s11 + $0x10] sm:$0xff]  ;;  %p502_p10 = scmp.ne.s32.totalorder %s294_s12, %s501_s23  ;;  %p774_p11 = scmp.ne.s32.totalorder %s770_s25, 0 }
  0x3c   : > { %v192_v15 = vld [vmem:[%s696_s11 + $0x8] sm:$0xff]  ;;  %v191_v16 = vld [vmem:[%s696_s11] sm:$0xff]  ;;  %s572_s27 = smov [#allocation6]  }
  0x3d   : > { %391 = vmatpush3.xpose.msra.mxu0 %v205_v2  ;;  %v190_v17 = vld [vmem:[%s763_s1] sm:$0x1]  ;;  %v208_v18 = vstv %s207_s7  ;;  %p503_p12 = pnand %p502_p10, %p774_p11  ;;  %s505_s2 = sshll.u32 %s572_s27, 4  ;;  %s506_s2 = int_to_ptr.vmem [resolvable:$false] %s505_s2 }
  0x3e   : > { %392 = vmatprep.subr.mxu0 %v570_v0  ;;  %s507_s28 = scalar_lea.vmem %s506_s2, 32  ;;  %p508_p5 = scmp.lt.s32.totalorder %s294_s12, %s506_s2 }
  0x3f   : > { %p504_p4 = pneg %p503_p12  ;;  %p509_p7 = scmp.lt.s32.totalorder %s507_s28, %s501_s23 }
  0x41   : > { %393 = vmatpush3.xpose.msra.mxu0 %v204_v3  ;;  %p510_p8 = por %p509_p7, %p508_p5 }
  0x42   : > { %394 = vmatprep.subr.mxu0 %v570_v0 }
  0x43   : > { %p511_p9 = pnand %p510_p8, %p504_p4 }
  0x45   : > { %395 = vmatpush3.xpose.msra.mxu0 %v203_v4 }
  0x46   : > { %396 = vmatprep.subr.mxu0 %v570_v0 }
  0x49   : > { %397 = vmatpush3.xpose.msra.mxu0 %v202_v5 }
  0x4a   : > { %398 = vmatprep.subr.mxu0 %v570_v0 }
  0x4d   : > { %399 = vmatpush3.xpose.msra.mxu0 %v201_v6 }
  0x4e   : > { %400 = vmatprep.subr.mxu0 %v570_v0 }
  0x51   : > { %401 = vmatpush3.xpose.msra.mxu0 %v200_v7 }
  0x52   : > { %402 = vmatprep.subr.mxu0 %v570_v0 }
  0x55   : > { %403 = vmatpush3.xpose.msra.mxu0 %v199_v8 }
  0x56   : > { %404 = vmatprep.subr.mxu0 %v570_v0 }
  0x59   : > { %405 = vmatpush3.xpose.msra.mxu0 %v198_v9 }
  0x5a   : > { %406 = vmatprep.subr.mxu0 %v570_v0 }
  0x5d   : > { %407 = vmatpush3.xpose.msra.mxu0 %v197_v10 }
  0x5e   : > { %408 = vmatprep.subr.mxu0 %v570_v0 }
  0x61   : > { %409 = vmatpush3.xpose.msra.mxu0 %v196_v11 }
  0x62   : > { %410 = vmatprep.subr.mxu0 %v570_v0 }
  0x65   : > { %411 = vmatpush3.xpose.msra.mxu0 %v195_v12 }
  0x66   : > { %412 = vmatprep.subr.mxu0 %v570_v0 }
  0x69   : > { %413 = vmatpush3.xpose.msra.mxu0 %v194_v13 }
  0x6a   : > { %414 = vmatprep.subr.mxu0 %v570_v0 }
  0x6d   : > { %415 = vmatpush3.xpose.msra.mxu0 %v193_v14 }
  0x6e   : > { %416 = vmatprep.subr.mxu0 %v570_v0 }
  0x71   : > { %417 = vmatpush3.xpose.msra.mxu0 %v192_v15 }
  0x72   : > { %418 = vmatprep.subr.mxu0 %v570_v0 }
  0x75   : > { %419 = vmatpush3.xpose.msra.mxu0 %v191_v16 }
  0x78   : > { %421 = vmatmul.mubr.f32.vlgmr.msra.gmra.mxu0 %v190_v17 }
 0x138   : > { %v275_v19 = vpop.f32.mrf.mxu0 }
 0x139   : > { %v276_v20 = vadd.f32 %v275_v19, %v208_v18 }
 0x13a   : > { %v422_v21 = vpop.f32.mrf.mxu0 }
 0x13b   : > { %279 = vst [vmem:[%s188_s9] sm:$0x1] %v276_v20 }
 0x13c   : > { %514 = shalt.err (!%p511_p9)
}
 0x13d   : > { %s515_s29 = scalar_lea.hbm %s726_s20, 16  ;;  %s519_s6 = scalar_lea.hbm %s765_s3, 48 }
 0x13e   : > { %p516_p13 = scmp.ne.s32.totalorder %s726_s20, %s515_s29  ;;  %p520_p2 = scmp.lt.s32.totalorder %s726_s20, %s765_s3 }
 0x13f   : > { %p521_p3 = scmp.lt.s32.totalorder %s519_s6, %s515_s29 }
 0x140   : > { %p517_p1 = pnand %p516_p13, %p774_p11 }
 0x141   : > { %p522_p6 = por %p521_p3, %p520_p2 }
 0x142   : > { %p518_p0 = pneg %p517_p1 }
 0x144   : > { %p523_p10 = pnand %p522_p6, %p518_p0 }
 0x146   : > { %526 = shalt.err (!%p523_p10)
}
 0x147   : > { %425 = dma.vmem_to_hbm [thread:$0]  (%p774_p11), %s294_s12, 16, %s726_s20, %s281_s21  }
 0x148 PF: > { %p436_p12 = scmp.ge.s32.totalorder %s565_s17, 2  ;;  %s305_s24 = sand.u32 1, %s553_s14  }
 0x149   : > { %p775_p4 = scmp.ne.s32.totalorder %s771_s26, 0  ;;  %s306_s5 = scalar_lea.sflag [#allocation5], %s305_s24 }
 0x14b   : > { %p432_p5 = pnand %p436_p12, %p775_p4 }
 0x14d   : > { %p433_p7 = pneg %p432_p5 }
 0x14f   : > { %548 = dma.done.wait (%p433_p7), %s306_s5, 16  }
 0x150   : > { %550 = vsyncadd (%p433_p7), %s306_s5, 4294967280  ;;  %p17_p8 = scmp.ge.s32.totalorder %s621_s19, 5   ;;  %s776_s14 = smov %s557_s15 }
 0x151   : > { %s777_s15 = smov %s561_s16  ;;  %s778_s16 = smov %s633_s22 }
 0x152   : > { %s779_s17 = smov %s621_s19  ;;  %19 = sbr.rel (!%p17_p8) target bundleno = 7 (0x7), region = 77 }
 0x157   :  { %310 = vsyncpa [#allocation4], 1 }
 0x158   :  { %312 = vsyncpa [#allocation4 + $0x1], 1 }
 0x159   :  { %313 = vsyncpa [#allocation5], 1 }
 0x15a   :  { %315 = vsyncpa [#allocation5 + $0x1], 1 }

</bundles_post_ra>
